<compile_context>
chip_gen: v5e
topology: v5e:2x2
jax: 0.10.0
libtpu: 0.0.40
codegen_flags: <defaults>
</compile_context>

<pallas_src>
import jax
import jax.numpy as jnp
from jax.experimental import pallas as pl
from jax.experimental.pallas import tpu as pltpu


def _group_all_kernel(xyz_ref, feat_ref, out_ref):
    # xyz_ref : (Bt, 3, Nt), feat_ref : (Bt, C, Nt), out_ref : (Bt, C+3, Nt)
    out_ref[:, 0:3, :] = xyz_ref[...]
    out_ref[:, 3:, :] = feat_ref[...]


def _pad8(x):
    return ((x + 7) // 8) * 8


def _vmem_limits():
    """Generation-aware (scoped_vmem_limit, tile_budget) in bytes."""
    cap = None
    try:
        info = pltpu.get_tpu_info()
        cap = getattr(info, "vmem_capacity_bytes", None)
    except Exception:
        cap = None
    if not cap:
        cap = 64 * 1024 * 1024          # assume the smallest (v7x per-TC VMEM)
    # Request well under physical capacity: 48 MiB on v7x, 96 MiB on v5e/v6e.
    limit = int(min(cap * 3 // 4, 96 * 1024 * 1024))
    budget = int(limit * 0.8)           # headroom for Mosaic-internal scratch
    return limit, budget


def _choose_tiling(B, C, N, itemsize, budget):
    """Pick (Bt, Nt, tile_bytes) for the (batch, lane) grid."""
    # Double-buffered VMEM footprint per (batch, lane) column, with the
    # channel dims padded to sublane multiples:
    #   inputs  : xyz (3 rows) + features (C rows)
    #   output  : C + 3 rows
    rows = _pad8(3) + _pad8(C) + _pad8(C + 3)
    bytes_per_col = 2 * rows * itemsize

    n128 = pl.cdiv(N, 128)
    n_pad = n128 * 128
    total = bytes_per_col * B * n_pad

    # >= ~8 pipelined steps for large inputs, tiles >= 2 MiB, <= budget.
    tile_cap = min(budget, max(2 << 20, total // 8))

    # Lane tile: a multiple of 128 (lane-dense, unmasked stores except the
    # edge block); collapse to the full dim if everything fits in one tile.
    max_cols = max(tile_cap // bytes_per_col, 128)
    nt = min(n_pad, (max_cols // 128) * 128)
    if nt >= N:
        nt = N                      # full-dim block (always legal)
    n_steps_n = pl.cdiv(N, nt)

    # Batch tile: as many batches per step as still fit under the cap.
    bt = int(max(1, min(B, tile_cap // max(bytes_per_col * nt, 1))))
    n_steps_b = pl.cdiv(B, bt)

    # Megacore: keep >= 2 grid steps whenever the problem has >= 2 natural
    # chunks so v7x's second TensorCore has work.
    if n_steps_b * n_steps_n < 2:
        if B >= 2:
            bt = pl.cdiv(B, 2)
        elif n128 >= 2:
            nt = pl.cdiv(n128, 2) * 128

    tile_bytes = bytes_per_col * bt * (pl.cdiv(nt, 128) * 128)
    return bt, nt, tile_bytes


def group_all(xyz, new_xyz=None, features=None, use_xyz=True, *,
              _max_tile_bytes=None):
    """Pallas implementation of pointnet2_utils.GroupAll.forward.

    xyz      : (B, N, 3)
    new_xyz  : ignored (kept for signature parity)
    features : (B, C, N) or None
    returns  : (B, C+3, 1, N) if (features is not None and use_xyz)
               (B, C,   1, N) if (features is not None and not use_xyz)
               (B, 3,   1, N) if features is None
    """
    del new_xyz  # ignored, exactly as in the PyTorch module
    B, N, _ = xyz.shape

    if features is None:
        # Tiny transpose + unsqueeze: XLA does this for free.
        return jnp.transpose(xyz, (0, 2, 1))[:, :, None, :]

    if not use_xyz:
        # Pure unsqueeze, no data movement worth a kernel.
        return features[:, :, None, :]

    C = features.shape[1]
    out_dtype = features.dtype
    # Hoist the transpose: xyz is only B*N*3 elements; pre-transposing makes
    # the kernel's xyz slab lane-dense with no in-kernel relayout.
    xyz_t = jnp.transpose(xyz, (0, 2, 1)).astype(out_dtype)   # (B, 3, N)

    limit, budget = _vmem_limits()
    if _max_tile_bytes is not None:        # test hook: force small tiles
        budget = min(budget, int(_max_tile_bytes))
    bt, nt, tile_bytes = _choose_tiling(
        B, C, N, jnp.dtype(out_dtype).itemsize, budget)
    grid = (pl.cdiv(B, bt), pl.cdiv(N, nt))
    # Always pass a scoped-VMEM limit; cover the (pathological) case where a
    # single column-tile exceeds the budget.
    vmem_limit = int(max(limit, tile_bytes + (2 << 20)))

    out = pl.pallas_call(
        _group_all_kernel,
        out_shape=jax.ShapeDtypeStruct((B, C + 3, N), out_dtype),
        grid=grid,
        in_specs=[
            pl.BlockSpec((bt, 3, nt), lambda b, n: (b, 0, n)),
            pl.BlockSpec((bt, C, nt), lambda b, n: (b, 0, n)),
        ],
        out_specs=pl.BlockSpec((bt, C + 3, nt), lambda b, n: (b, 0, n)),
        compiler_params=pltpu.CompilerParams(
            dimension_semantics=("parallel", "parallel"),
            vmem_limit_bytes=vmem_limit,
        ),
    )(xyz_t, features)
    return out[:, :, None, :]  # (B, C+3, 1, N)


def _reference(xyz, features, use_xyz=True):
    gx = jnp.transpose(xyz, (0, 2, 1))[:, :, None, :]
    if features is None:
        return gx
    gf = features[:, :, None, :]
    return jnp.concatenate([gx, gf], axis=1) if use_xyz else gf


if __name__ == "__main__":
    # GroupAll has no parameters, so nothing to initialize.
    key = jax.random.PRNGKey(0)
    k1, k2, k3 = jax.random.split(key, 3)

    B, N, C = 2, 256, 8
    xyz = jax.random.normal(k1, (B, N, 3), dtype=jnp.float32)
    new_xyz = jax.random.normal(k2, (B, 1, 3), dtype=jnp.float32)   # ignored
    features = jax.random.normal(k3, (B, C, N), dtype=jnp.float32)

    # Main path: use_xyz=True with features (lane-dense N, multiple of 128).
    out = jax.block_until_ready(group_all(xyz, new_xyz, features, use_xyz=True))
    ref = _reference(xyz, features, use_xyz=True)
    assert out.shape == (B, C + 3, 1, N), out.shape
    assert out.dtype == ref.dtype
    assert jnp.allclose(out, ref), "mismatch vs reference (use_xyz=True)"

    # N not a multiple of 128, still small enough for a full-dim lane block.
    N2 = 200
    xyz2 = jax.random.normal(k1, (B, N2, 3), dtype=jnp.float32)
    feat2 = jax.random.normal(k3, (B, C, N2), dtype=jnp.float32)
    out2 = jax.block_until_ready(group_all(xyz2, None, feat2, use_xyz=True))
    assert out2.shape == (B, C + 3, 1, N2)
    assert jnp.allclose(out2, _reference(xyz2, feat2, True)), \
        "mismatch vs reference (N % 128 != 0, full-dim block)"

    # Force multi-step cdiv tiling with a masked edge block (small budget).
    N3 = 448   # 3*128 + 64 valid columns in the last lane block
    xyz3 = jax.random.normal(k1, (B, N3, 3), dtype=jnp.float32)
    feat3 = jax.random.normal(k3, (B, C, N3), dtype=jnp.float32)
    out3 = jax.block_until_ready(
        group_all(xyz3, new_xyz, feat3, use_xyz=True, _max_tile_bytes=64 * 1024))
    assert out3.shape == (B, C + 3, 1, N3)
    assert jnp.allclose(out3, _reference(xyz3, feat3, True)), \
        "mismatch vs reference (masked edge block path)"

    # features=None and use_xyz=False paths (pure XLA, no kernel).
    out_xyz_only = jax.block_until_ready(group_all(xyz, new_xyz, None))
    assert out_xyz_only.shape == (B, 3, 1, N)
    assert jnp.allclose(out_xyz_only, _reference(xyz, None))

    out_no_xyz = jax.block_until_ready(
        group_all(xyz, new_xyz, features, use_xyz=False))
    assert out_no_xyz.shape == (B, C, 1, N)
    assert jnp.allclose(out_no_xyz, features[:, :, None, :])

    print("KERNEL_OK")
</pallas_src>

<mosaic_0001>
module attributes {stable_mosaic.version = 11 : i64} {
  func.func @_group_all_kernel(%arg0: i32, %arg1: i32, %arg2: memref<1x3x256xf32, #tpu.memory_space<vmem>>, %arg3: memref<1x8x256xf32, #tpu.memory_space<vmem>>, %arg4: memref<1x11x256xf32, #tpu.memory_space<vmem>>) attributes {dimension_semantics = [#tpu.dimension_semantics<parallel>, #tpu.dimension_semantics<parallel>], iteration_bounds = array<i64: 2, 1>, scalar_prefetch = 0 : i64, scratch_operands = 0 : i64, tpu.core_type = #tpu.core_type<tc>, window_params = [{transform_indices = @transform_0, window_bounds = array<i64: 1, 3, 256>}, {transform_indices = @transform_1, window_bounds = array<i64: 1, 8, 256>}, {transform_indices = @transform_2, window_bounds = array<i64: 1, 11, 256>}]} {
    %c0 = arith.constant 0 : index
    %c0_0 = arith.constant 0 : index
    %c0_1 = arith.constant 0 : index
    %0 = vector.load %arg2[%c0, %c0_0, %c0_1] : memref<1x3x256xf32, #tpu.memory_space<vmem>>, vector<1x3x256xf32>
    %c0_2 = arith.constant 0 : index
    %c0_3 = arith.constant 0 : index
    %c0_4 = arith.constant 0 : index
    %1 = vector.load %arg4[%c0_2, %c0_3, %c0_4] : memref<1x11x256xf32, #tpu.memory_space<vmem>>, vector<1x3x256xf32>
    tpu.vector_store %arg4[%c0_2, %c0_3, %c0_4], %0 {strides = array<i32>} : memref<1x11x256xf32, #tpu.memory_space<vmem>>, vector<1x3x256xf32>,
    %c0_5 = arith.constant 0 : index
    %c0_6 = arith.constant 0 : index
    %c0_7 = arith.constant 0 : index
    %2 = vector.load %arg3[%c0_5, %c0_6, %c0_7] : memref<1x8x256xf32, #tpu.memory_space<vmem>>, vector<1x8x256xf32>
    %c0_8 = arith.constant 0 : index
    %c3 = arith.constant 3 : index
    %c0_9 = arith.constant 0 : index
    %3 = vector.load %arg4[%c0_8, %c3, %c0_9] : memref<1x11x256xf32, #tpu.memory_space<vmem>>, vector<1x8x256xf32>
    tpu.vector_store %arg4[%c0_8, %c3, %c0_9], %2 {strides = array<i32>} : memref<1x11x256xf32, #tpu.memory_space<vmem>>, vector<1x8x256xf32>,
    return
  }
  func.func @transform_0(%arg0: i32, %arg1: i32) -> (i32, i32, i32) {
    %c0_i32 = arith.constant 0 : i32
    %c0_i32_0 = arith.constant 0 : i32
    return %arg0, %c0_i32, %arg1 : i32, i32, i32
  }
  func.func @transform_1(%arg0: i32, %arg1: i32) -> (i32, i32, i32) {
    %c0_i32 = arith.constant 0 : i32
    %c0_i32_0 = arith.constant 0 : i32
    return %arg0, %c0_i32, %arg1 : i32, i32, i32
  }
  func.func @transform_2(%arg0: i32, %arg1: i32) -> (i32, i32, i32) {
    %c0_i32 = arith.constant 0 : i32
    %c0_i32_0 = arith.constant 0 : i32
    return %arg0, %c0_i32, %arg1 : i32, i32, i32
  }
}

</mosaic_0001>

<bundles_post_ra>
// kernel: tpu_custom_call.1
= control target key start
LH: loop header
LB: loop body
LE: loop exit
PB: predicated region body
PF: predicated region fallthrough
CT: control target
= control target key end

     0   :  { %7 = vsyncpa [#allocation3], 0  ;;  %s623_s0 = inlined_call_operand.vmem [shape: f32[2,3,256], index: 0, kind: input, shape index: {}]   ;;  %s624_s1 = inlined_call_operand.hbm [shape: f32[2,8,256], index: 1, kind: input, shape index: {}]   ;;  %s625_s2 = inlined_call_operand.vmem [shape: f32[2,11,256], index: 2, kind: output, shape index: {}]  }
   0x1   :  { %9 = vsyncpa [#allocation3 + $0x1], 0  ;;  %s532_s9 = smov 0   ;;  %s534_s10 = smov 0  }
   0x2   :  { %s536_s11 = smov 0   ;;  %s538_s12 = smov 0  }
   0x3   :  { %s540_s13 = smov 0   ;;  %s542_s14 = smov 0  }
   0x4 LB: > { %s362_s15 = sadd.s32 4294967295, %s515_s14   ;;  %s27_s16 = sadd.s32 1, %s511_s13  ;;  %s515_s14 = sphi %s542_s14, %s15_s14   ;;  %s511_s13 = sphi %s540_s13, %s632_s13   ;;  %s507_s12 = sphi %s538_s12, %s631_s12   ;;  %s503_s11 = sphi %s536_s11, %s630_s11   ;;  %s499_s10 = sphi %s534_s10, %s629_s10   ;;  %s495_s9 = sphi %s532_s9, %s628_s9  }
   0x5   : > { %p29_p0 = scmp.ge.s32.totalorder %s27_s16, 2  ;;  %s64_s17 = sadd.s32 1, %s503_s11 }
   0x6   : > { %p71_p1 = scmp.ne.s32.totalorder %s503_s11, %s499_s10  ;;  %p72_p2 = scmp.eq.s32.totalorder %s515_s14, 0 }
   0x7   : > { %s634_s16 = smov (%p29_p0, %s27_s16), 0  ;;  %p77_p4 = scmp.ne.s32.totalorder %s499_s10, %s495_s9 }
   0x8   : > { %p568_p3 = por %p72_p2, %p71_p1  ;;  %s59_s19 = ssub.s32 %s511_s13, %s634_s16 }
   0x9   : > { %p78_p5 = scmp.eq.s32.totalorder %s362_s15, 0  ;;  %p62_p6 = scmp.eq.s32.totalorder %s59_s19, 0 }
   0xa   : > { %p386_p8 = scmp.lt.s32.totalorder %s515_s14, 2  ;;  %s142_s22 = sand.u32 1, %s503_s11  }
   0xb   : > { %p575_p7 = por %p78_p5, %p77_p4  ;;  %s377_s23 = sshll.u32 %s511_s13, 4 }
   0xc   : > { %s581_s21 = scalar_select %p62_p6, %s503_s11, %s64_s17  }
   0xd   : > { %s366_s24 = sshll.u32 %s142_s22, 4  ;;  %s153_s27 = scalar_lea.hbm %s624_s1, %s377_s23 }
   0xe   : > { %s155_s28 = sshll.u32 %s153_s27, 4  ;;  %s146_s29 = scalar_lea.vmem [#allocation2], %s366_s24  ;;  %s156_s28 = int_to_ptr.hbm [resolvable:$true] %s155_s28 }
   0xf   : > { %s157_s30 = sshll.u32 %s146_s29, 4  ;;  %p383_p9 = pnand %p386_p8, %p568_p3  ;;  %s158_s30 = int_to_ptr.vmem [resolvable:$true] %s157_s30 }
  0x10   : > { %p369_p10 = scmp.ge.s32.totalorder %s515_s14, 1  ;;  %p162_p11 = scmp.lt.s32.totalorder %s515_s14, 3 }
  0x11   : > { %s143_s3 = scalar_lea.sflag [#allocation3], %s142_s22 }
  0x12   : > { %385 = dma.hbm_to_vmem [thread:$0]  (!%p383_p9), %s156_s28, 256, %s158_s30, %s143_s3  }
  0x13   : > { %p163_p12 = pnand %p369_p10, %p162_p11 }
  0x14   : > { %s168_s4 = sand.u32 (!%p163_p12), 1, %s499_s10  }
  0x15   : > { %166 = sbr.rel (%p163_p12) target bundleno = 43 (0x2b), region = 28  ;;  %s370_s5 = sshll.u32 (!%p163_p12), %s168_s4, 4 }
  0x16   : > { %s169_s6 = scalar_lea.sflag (!%p163_p12), [#allocation3], %s168_s4  ;;  %s172_s7 = scalar_lea.vmem (!%p163_p12), [#allocation2], %s370_s5 }
  0x1a   : > { %490 = dma.done.wait (%p575_p7), %s169_s6, 256  }
  0x1b   : > { %492 = vsyncadd (%p575_p7), %s169_s6, 4294967040  ;;  %p208_p13 = scmp.lt.s32.totalorder %s507_s12, 1  ;;  %v237_v1 = vld [vmem:[%s172_s7] sm:$0xff]  ;;  %v238_v2 = vld [vmem:[%s172_s7 + $0x8] sm:$0xff] }
  0x1c   : > { %v241_v3 = vrot.slane %v237_v1, 5  ;;  %v242_v4 = vrot.slane %v238_v2, 5 }
  0x1d   : > { %s636_s12 = smov (!%p208_p13, %s507_s12), 1 }
  0x1e   : > { %s378_s8 = sshll.u32 %s636_s12, 3  ;;  %s379_s9 = sshll.u32 %s636_s12, 5 }
  0x1f   : > { %s215_s18 = scalar_lea.vmem %s623_s0, %s378_s8  ;;  %s226_s23 = scalar_lea.vmem %s625_s2, %s379_s9 }
  0x20   : > { %v228_v0 = vld [vmem:[%s215_s18] sm:$0x77]  ;;  %245 = vst [vmem:[%s226_s23] sm:$0xf8] %v241_v3 }
  0x21   : > { %230 = vst [vmem:[#allocation1] ss:$2 sm:$0xff] %v228_v0 }
  0x22   : > { %247 = vst [vmem:[%s226_s23 + $0x10] sm:$0x7] %v241_v3 }
  0x23   : > { %246 = vst [vmem:[%s226_s23 + $0x8] sm:$0xf8] %v242_v4 }
  0x24   : > { %248 = vst [vmem:[%s226_s23 + $0x18] sm:$0x7] %v242_v4 }
  0x28   : > { %v231_v5 = vld.sshfl [vmem:[#allocation1] sm:$0xff pattern:$0x75316420]  ;;  %v232_v6 = vld.sshfl [vmem:[#allocation1 + $0x8] sm:$0xff pattern:$0x75316420] }
  0x29   : > { %235 = vst [vmem:[%s226_s23] sm:$0x7] %v231_v5 }
  0x2a   : > { %236 = vst [vmem:[%s226_s23 + $0x8] sm:$0x7] %v232_v6 }
  0x2b PF: > { %s15_s14 = sadd.s32 1, %s515_s14   ;;  %s628_s9 = smov %s499_s10 }
  0x2c   : > { %p12_p0 = scmp.ge.s32.totalorder %s15_s14, 4   ;;  %s629_s10 = smov %s503_s11 }
  0x2d   : > { %s630_s11 = smov %s581_s21  ;;  %s631_s12 = smov %s511_s13 }
  0x2e   : > { %s632_s13 = smov %s634_s16  ;;  %14 = sbr.rel (!%p12_p0) target bundleno = 4 (0x4), region = 71 }
  0x33   :  { %279 = vsyncpa [#allocation3], 1 }
  0x34   :  { %281 = vsyncpa [#allocation3 + $0x1], 1 }

</bundles_post_ra>
